<compile_context>
chip_gen: v7x
topology: tpu7x:2x2x1
jax: 0.10.0
libtpu: 0.0.40
codegen_flags: <defaults>
</compile_context>

<pallas_src>
import functools

import jax
import jax.numpy as jnp
from jax.experimental import pallas as pl
from jax.experimental.pallas import tpu as pltpu


def _round_up(x, m):
    return ((x + m - 1) // m) * m


def classifier_kernel(h_ref, w1_ref, b1_ref, w2_ref, b2_ref, logp_ref):
    # lin1 + ReLU.  Dropout is identity at inference.
    # TODO(synk): training-mode dropout (args.drop_rate) not implemented; eval semantics used.
    # h arrives as f32; cast to bf16 on the VPU right before the MXU (no wrapper copy).
    h_bf = h_ref[...].astype(jnp.bfloat16)
    hidden = jnp.dot(h_bf, w1_ref[...], preferred_element_type=jnp.float32)
    hidden = jnp.maximum(hidden + b1_ref[...], 0.0)          # f32 elementwise

    # lin2 (tag dim padded to 128 lanes; padded bias = -1e30 so padded cols never win)
    scores = jnp.dot(hidden.astype(jnp.bfloat16), w2_ref[...],
                     preferred_element_type=jnp.float32)
    scores = scores + b2_ref[...]

    # log_softmax over last dim (exactly two XLU cross-lane reductions: max + sum)
    m = jnp.max(scores, axis=-1, keepdims=True)
    lse = jnp.log(jnp.sum(jnp.exp(scores - m), axis=-1, keepdims=True)) + m
    logp_ref[...] = scores - lse


@functools.partial(jax.jit, static_argnames=("tag_size", "tm_max"))
def classifier_forward(h, w1_bf, b1, w2_bf, b2_pad, tag_size, tm_max=1024):
    """Returns (y_hat [N] int32, log_prob [N, tag_size] float32).

    h: f32 [N, D];  w1_bf: bf16 [D, Hd];  b1: f32 [1, Hd];
    w2_bf: bf16 [Hd, 128-padded];  b2_pad: f32 [1, 128-padded] (pad cols = -1e30).
    """
    N, D = h.shape
    Hd = w1_bf.shape[1]
    Tp = w2_bf.shape[1]

    # Row tile: multiple of 16 (bf16 sublane pack), big enough to amortize the
    # ~0.35 us/grid-step overhead, never larger than the (rounded) problem.
    tm = min(tm_max, _round_up(N, 16))
    # v7x has 2 TensorCores: if the whole problem fits one tile but is big enough
    # to split, halve the tile so the parallel grid axis has >= 2 steps.
    if pl.cdiv(N, tm) == 1 and N > 16:
        tm = max(16, _round_up(pl.cdiv(N, 2), 16))
    grid_m = pl.cdiv(N, tm)  # ragged last tile handled by masked reads/writes

    logp_pad = pl.pallas_call(
        classifier_kernel,
        out_shape=jax.ShapeDtypeStruct((N, Tp), jnp.float32),
        grid_spec=pltpu.PrefetchScalarGridSpec(
            num_scalar_prefetch=0,
            grid=(grid_m,),
            in_specs=[
                pl.BlockSpec((tm, D), lambda i: (i, 0)),      # h tile (f32, cast in-kernel)
                pl.BlockSpec((D, Hd), lambda i: (0, 0)),      # W1 (resident, bf16)
                pl.BlockSpec((1, Hd), lambda i: (0, 0)),      # b1 (f32)
                pl.BlockSpec((Hd, Tp), lambda i: (0, 0)),     # W2 padded (resident, bf16)
                pl.BlockSpec((1, Tp), lambda i: (0, 0)),      # b2 padded (f32)
            ],
            out_specs=pl.BlockSpec((tm, Tp), lambda i: (i, 0)),
        ),
        compiler_params=pltpu.CompilerParams(
            dimension_semantics=("parallel",)),                # shards across v7x's 2 TCs
    )(h, w1_bf, b1, w2_bf, b2_pad)

    # Slice away the padded tag columns (rows need no slice: out_shape is exactly N).
    logp = logp_pad[:, :tag_size]
    # argmax(log_softmax(x)) == argmax(x); doing it here on the real columns keeps the
    # kernel free of a lane-width-1 (masked-store) output and two extra XLU reductions.
    y_hat = jnp.argmax(logp, axis=-1).astype(jnp.int32)
    return y_hat, logp


def make_params(key, input_dim, hidden_size, tag_size, tag_pad=128):
    """Deterministic synthetic parameters (nn.Linear-style, stored as [in, out]).

    MXU operands (w1, w2) are cast to bf16 ONCE here and reused every call;
    biases stay f32. Padded tag columns of b2 get -1e30 so they never win.
    """
    k1, k2, k3, k4 = jax.random.split(key, 4)
    w1 = jax.random.normal(k1, (input_dim, hidden_size), jnp.float32) * 0.1
    b1 = jax.random.normal(k2, (1, hidden_size), jnp.float32) * 0.1
    w2 = jax.random.normal(k3, (hidden_size, tag_size), jnp.float32) * 0.1
    b2 = jax.random.normal(k4, (1, tag_size), jnp.float32) * 0.1

    w1_bf = w1.astype(jnp.bfloat16)
    w2_pad = jnp.zeros((hidden_size, tag_pad), jnp.float32).at[:, :tag_size].set(w2)
    w2_bf = w2_pad.astype(jnp.bfloat16)
    b2_pad = jnp.full((1, tag_pad), -1e30, jnp.float32).at[:, :tag_size].set(b2)
    return w1, b1, w2, b2, w1_bf, w2_bf, b2_pad


def reference_forward(h, w1, b1, w2, b2):
    # Same numerics as the kernel: bf16 MXU operands, f32 accumulation/elementwise.
    hidden = jnp.dot(h.astype(jnp.bfloat16), w1.astype(jnp.bfloat16),
                     preferred_element_type=jnp.float32) + b1
    hidden = jax.nn.relu(hidden)
    scores = jnp.dot(hidden.astype(jnp.bfloat16), w2.astype(jnp.bfloat16),
                     preferred_element_type=jnp.float32) + b2
    logp = jax.nn.log_softmax(scores, axis=-1)
    return jnp.argmax(logp, axis=-1).astype(jnp.int32), logp


if __name__ == "__main__":
    input_dim, hidden_size, tag_size = 32, 32, 6
    N = 16  # total number of utterances (sum of text_len_tensor)

    key = jax.random.PRNGKey(0)
    kh, kp = jax.random.split(key)
    h = jax.random.normal(kh, (N, input_dim), jnp.float32)
    text_len_tensor = jnp.array([8, 8], dtype=jnp.int32)  # unused by forward()

    w1, b1, w2, b2, w1_bf, w2_bf, b2_pad = make_params(kp, input_dim, hidden_size, tag_size)

    y_hat, logp = classifier_forward(h, w1_bf, b1, w2_bf, b2_pad, tag_size)
    y_hat = jax.block_until_ready(y_hat)
    logp = jax.block_until_ready(logp)

    # correctness check against a pure-JAX reference with matching numerics
    y_ref, logp_ref = reference_forward(h, w1, b1, w2, b2)
    assert y_hat.shape == (N,)
    assert logp.shape == (N, tag_size)
    assert jnp.array_equal(y_hat, y_ref), (y_hat, y_ref)
    assert jnp.allclose(logp, logp_ref, atol=1e-4, rtol=1e-4)

    print("KERNEL_OK")
</pallas_src>

<mosaic_0001>
module attributes {stable_mosaic.version = 11 : i64} {
  func.func @classifier_kernel(%arg0: i32, %arg1: memref<16x32xf32, #tpu.memory_space<vmem>>, %arg2: memref<32x32xbf16, #tpu.memory_space<vmem>>, %arg3: memref<1x32xf32, #tpu.memory_space<vmem>>, %arg4: memref<32x128xbf16, #tpu.memory_space<vmem>>, %arg5: memref<1x128xf32, #tpu.memory_space<vmem>>, %arg6: memref<16x128xf32, #tpu.memory_space<vmem>>) attributes {dimension_semantics = [#tpu.dimension_semantics<parallel>], iteration_bounds = array<i64: 1>, scalar_prefetch = 0 : i64, scratch_operands = 0 : i64, tpu.core_type = #tpu.core_type<tc>, window_params = [{transform_indices = @transform_0, window_bounds = array<i64: 16, 32>}, {pipeline_mode = #tpu.pipeline_mode<synchronous>, transform_indices = @transform_1, window_bounds = array<i64: 32, 32>}, {pipeline_mode = #tpu.pipeline_mode<synchronous>, transform_indices = @transform_2, window_bounds = array<i64: 1, 32>}, {pipeline_mode = #tpu.pipeline_mode<synchronous>, transform_indices = @transform_3, window_bounds = array<i64: 32, 128>}, {pipeline_mode = #tpu.pipeline_mode<synchronous>, transform_indices = @transform_4, window_bounds = array<i64: 1, 128>}, {transform_indices = @transform_5, window_bounds = array<i64: 16, 128>}]} {
    %c0 = arith.constant 0 : index
    %c0_0 = arith.constant 0 : index
    %0 = vector.load %arg1[%c0, %c0_0] : memref<16x32xf32, #tpu.memory_space<vmem>>, vector<16x32xf32>
    %1 = arith.truncf %0 : vector<16x32xf32> to vector<16x32xbf16>
    %c0_1 = arith.constant 0 : index
    %c0_2 = arith.constant 0 : index
    %2 = vector.load %arg2[%c0_1, %c0_2] : memref<32x32xbf16, #tpu.memory_space<vmem>>, vector<32x32xbf16>
    %cst = arith.constant dense<0.000000e+00> : vector<16x32xf32>
    %3 = tpu.matmul %1, %2, %cst {dimension_numbers = #tpu.dot_dimension_numbers<[1], [0], [0], [1], [0, 0, 1, 1], [], []>} : vector<16x32xbf16>, vector<32x32xbf16>, vector<16x32xf32> -> vector<16x32xf32>
    %c0_3 = arith.constant 0 : index
    %c0_4 = arith.constant 0 : index
    %4 = vector.load %arg3[%c0_3, %c0_4] : memref<1x32xf32, #tpu.memory_space<vmem>>, vector<1x32xf32>
    %5 = vector.broadcast %4 : vector<1x32xf32> to vector<16x32xf32>
    %6 = arith.addf %3, %5 : vector<16x32xf32>
    %cst_5 = arith.constant 0.000000e+00 : f32
    %7 = vector.broadcast %cst_5 : f32 to vector<16x32xf32>
    %8 = arith.maximumf %6, %7 : vector<16x32xf32>
    %9 = arith.truncf %8 : vector<16x32xf32> to vector<16x32xbf16>
    %c0_6 = arith.constant 0 : index
    %c0_7 = arith.constant 0 : index
    %10 = vector.load %arg4[%c0_6, %c0_7] : memref<32x128xbf16, #tpu.memory_space<vmem>>, vector<32x128xbf16>
    %cst_8 = arith.constant dense<0.000000e+00> : vector<16x128xf32>
    %11 = tpu.matmul %9, %10, %cst_8 {dimension_numbers = #tpu.dot_dimension_numbers<[1], [0], [0], [1], [0, 0, 1, 1], [], []>} : vector<16x32xbf16>, vector<32x128xbf16>, vector<16x128xf32> -> vector<16x128xf32>
    %c0_9 = arith.constant 0 : index
    %c0_10 = arith.constant 0 : index
    %12 = vector.load %arg5[%c0_9, %c0_10] : memref<1x128xf32, #tpu.memory_space<vmem>>, vector<1x128xf32>
    %13 = vector.broadcast %12 : vector<1x128xf32> to vector<16x128xf32>
    %14 = arith.addf %11, %13 : vector<16x128xf32>
    %cst_11 = arith.constant dense<0xFF800000> : vector<16xf32>
    %15 = vector.multi_reduction <maximumf>, %14, %cst_11 [1] : vector<16x128xf32> to vector<16xf32>
    %16 = vector.shape_cast %15 : vector<16xf32> to vector<16x1xf32>
    %17 = vector.broadcast %16 : vector<16x1xf32> to vector<16x128xf32>
    %18 = arith.subf %14, %17 : vector<16x128xf32>
    %19 = math.exp %18 : vector<16x128xf32>
    %cst_12 = arith.constant dense<0.000000e+00> : vector<16xf32>
    %20 = vector.multi_reduction <add>, %19, %cst_12 [1] : vector<16x128xf32> to vector<16xf32>
    %21 = vector.shape_cast %20 : vector<16xf32> to vector<16x1xf32>
    %22 = math.log %21 : vector<16x1xf32>
    %23 = arith.addf %22, %16 : vector<16x1xf32>
    %24 = vector.broadcast %23 : vector<16x1xf32> to vector<16x128xf32>
    %25 = arith.subf %14, %24 : vector<16x128xf32>
    %c0_13 = arith.constant 0 : index
    %c0_14 = arith.constant 0 : index
    %26 = vector.load %arg6[%c0_13, %c0_14] : memref<16x128xf32, #tpu.memory_space<vmem>>, vector<16x128xf32>
    tpu.vector_store %arg6[%c0_13, %c0_14], %25 {strides = array<i32>} : memref<16x128xf32, #tpu.memory_space<vmem>>, vector<16x128xf32>,
    return
  }
  func.func @transform_0(%arg0: i32) -> (i32, i32) {
    %c0_i32 = arith.constant 0 : i32
    %c0_i32_0 = arith.constant 0 : i32
    return %arg0, %c0_i32 : i32, i32
  }
  func.func @transform_1(%arg0: i32) -> (i32, i32) {
    %c0_i32 = arith.constant 0 : i32
    %c0_i32_0 = arith.constant 0 : i32
    %c0_i32_1 = arith.constant 0 : i32
    return %c0_i32, %c0_i32_0 : i32, i32
  }
  func.func @transform_2(%arg0: i32) -> (i32, i32) {
    %c0_i32 = arith.constant 0 : i32
    %c0_i32_0 = arith.constant 0 : i32
    %c0_i32_1 = arith.constant 0 : i32
    return %c0_i32, %c0_i32_0 : i32, i32
  }
  func.func @transform_3(%arg0: i32) -> (i32, i32) {
    %c0_i32 = arith.constant 0 : i32
    %c0_i32_0 = arith.constant 0 : i32
    %c0_i32_1 = arith.constant 0 : i32
    return %c0_i32, %c0_i32_0 : i32, i32
  }
  func.func @transform_4(%arg0: i32) -> (i32, i32) {
    %c0_i32 = arith.constant 0 : i32
    %c0_i32_0 = arith.constant 0 : i32
    %c0_i32_1 = arith.constant 0 : i32
    return %c0_i32, %c0_i32_0 : i32, i32
  }
  func.func @transform_5(%arg0: i32) -> (i32, i32) {
    %c0_i32 = arith.constant 0 : i32
    %c0_i32_0 = arith.constant 0 : i32
    return %arg0, %c0_i32 : i32, i32
  }
}

</mosaic_0001>

<bundles_post_ra>
// kernel: classifier_forward.1
= control target key start
LH: loop header
LB: loop body
LE: loop exit
PB: predicated region body
PF: predicated region fallthrough
CT: control target
= control target key end

     0   :  { %10 = vsyncpa [#allocation3], 0  ;;  %s449_s0 = inlined_call_operand.hbm [shape: f32[16,32], index: 0, kind: input, shape index: {}]   ;;  %s450_s1 = inlined_call_operand.hbm [shape: bf16[32,32], index: 1, kind: input, shape index: {}]   ;;  %s451_s2 = inlined_call_operand.vmem [shape: f32[1,32], index: 2, kind: input, shape index: {}]   ;;  %s452_s3 = inlined_call_operand.hbm [shape: bf16[32,128], index: 3, kind: input, shape index: {}]   ;;  %s453_s4 = inlined_call_operand.vmem [shape: f32[1,128], index: 4, kind: input, shape index: {}]   ;;  %s454_s5 = inlined_call_operand.vmem [shape: f32[16,128], index: 5, kind: output, shape index: {}]  }
   0x1   :  { %11 = vsyncpa [#allocation5], 0  ;;  %s354_s18 = smov [#allocation4]   ;;  %s284_s22 = scalar_lea.hbm %s450_s1, 256 }
   0x2   :  { %s29_s19 = sshll.u32 %s354_s18, 4  ;;  %p285_p0 = scmp.ne.s32.totalorder %s450_s1, %s284_s22  ;;  %s30_s19 = int_to_ptr.vmem [resolvable:$true] %s29_s19 }
   0x3   :  { %p288_p1 = scmp.lt.u32.totalorder %s284_s22, %s450_s1 }
   0x5   :  { %p290_p2 = pnand %p288_p1, %p285_p0 }
   0x7   :  { %293 = shalt.err (!%p290_p2)
}
   0x8   :  { %s294_s27 = scalar_lea.vmem %s30_s19, 256  ;;  %p299_p4 = scmp.lt.s32.totalorder %s30_s19, %s30_s19 }
   0x9   :  { %p295_p3 = scmp.ne.s32.totalorder %s30_s19, %s294_s27  ;;  %p300_p5 = scmp.lt.s32.totalorder %s294_s27, %s294_s27 }
   0xb   :  { %p301_p6 = por %p300_p5, %p299_p4 }
   0xd   :  { %p302_p7 = pnand %p301_p6, %p295_p3 }
   0xf   :  { %305 = shalt.err (!%p302_p7)
}
  0x10   :  { %s355_s28 = smov 64   ;;  %s356_s29 = smov 4  }
  0x11   :  { %35 = dma.hbm_to_vmem [thread:$0]  %s450_s1, 256, %s30_s19, [#allocation5], %s355_s28, %s355_s28, %s356_s29  }
  0x12   :  { %s357_s7 = smov [#allocation2]   ;;  %s306_s11 = scalar_lea.hbm %s449_s0, 256 }
  0x13   :  { %s17_s8 = sshll.u32 %s357_s7, 4  ;;  %p307_p8 = scmp.ne.s32.totalorder %s449_s0, %s306_s11  ;;  %s18_s8 = int_to_ptr.vmem [resolvable:$true] %s17_s8 }
  0x14   :  { %p310_p9 = scmp.lt.u32.totalorder %s306_s11, %s449_s0 }
  0x16   :  { %p312_p10 = pnand %p310_p9, %p307_p8 }
  0x18   :  { %315 = shalt.err (!%p312_p10)
}
  0x19   :  { %s316_s16 = scalar_lea.vmem %s18_s8, 256  ;;  %p321_p12 = scmp.lt.s32.totalorder %s18_s8, %s18_s8 }
  0x1a   :  { %p317_p11 = scmp.ne.s32.totalorder %s18_s8, %s316_s16  ;;  %p322_p13 = scmp.lt.s32.totalorder %s316_s16, %s316_s16 }
  0x1c   :  { %p323_p0 = por %p322_p13, %p321_p12 }
  0x1e   :  { %p324_p1 = pnand %p323_p0, %p317_p11 }
  0x20   :  { %327 = shalt.err (!%p324_p1)
}
  0x21   :  { %s358_s1 = smov 128   ;;  %s359_s17 = smov 8  }
  0x22   :  { %23 = dma.hbm_to_vmem [thread:$0]  %s449_s0, 256, %s18_s8, [#allocation3], %s358_s1, %s358_s1, %s359_s17  }
  0x23   :  { %s360_s20 = smov [#allocation6]   ;;  %s328_s24 = scalar_lea.hbm %s452_s3, 256 }
  0x24   :  { %s43_s21 = sshll.u32 %s360_s20, 4  ;;  %p329_p2 = scmp.ne.s32.totalorder %s452_s3, %s328_s24  ;;  %s44_s21 = int_to_ptr.vmem [resolvable:$true] %s43_s21 }
  0x25   :  { %p332_p3 = scmp.lt.u32.totalorder %s328_s24, %s452_s3 }
  0x27   :  { %p334_p4 = pnand %p332_p3, %p329_p2 }
  0x29   :  { %337 = shalt.err (!%p334_p4)
}
  0x2a   :  { %s338_s6 = scalar_lea.vmem %s44_s21, 256  ;;  %p343_p6 = scmp.lt.s32.totalorder %s44_s21, %s44_s21 }
  0x2b   :  { %p339_p5 = scmp.ne.s32.totalorder %s44_s21, %s338_s6  ;;  %p344_p7 = scmp.lt.s32.totalorder %s338_s6, %s338_s6 }
  0x2d   :  { %p345_p8 = por %p344_p7, %p343_p6 }
  0x2f   :  { %p346_p9 = pnand %p345_p8, %p339_p5 }
  0x31   :  { %349 = shalt.err (!%p346_p9)
}
  0x32   :  { %49 = dma.hbm_to_vmem [thread:$0]  %s452_s3, 256, %s44_s21, [#allocation5], %s355_s28, %s355_s28, %s356_s29  }
  0x33   :  { %350 = dma.done.wait [#allocation3], 256  }
  0x34   :  { %351 = vsyncadd [#allocation3], 4294967040 }
  0x35   :  { %352 = dma.done.wait [#allocation5], 512  }
  0x36   :  { %353 = vsyncadd [#allocation5], 4294966784  ;;  %v361_v0 = vmov 0.0   ;;  %vm362_vm0 = vmmov 0   ;;  %v272_v1 = vld [vmem:[#allocation4] sm:$0xff]   ;;  %v273_v2 = vld [vmem:[#allocation4 + $0x8] sm:$0xff]  }
  0x37   :  { %247 = vmatprep.subr.bf16.mxu0 %v361_v0  ;;  %251 = vmatprep.mubr.msk.bf16.mxu0 %vm362_vm0, %v361_v0  ;;  %v62_v3 = vld [vmem:[#allocation2] sm:$0xff]  ;;  %v63_v4 = vld [vmem:[#allocation2 + $0x8] sm:$0xff]  ;;  %vm88_vm1 = vcmask 261120  }
  0x38   :  { %255 = vmatprep.subr.bf16.mxu1 %v361_v0  ;;  %259 = vmatprep.mubr.msk.bf16.mxu1 %vm362_vm0, %v361_v0  ;;  %v64_v5 = vpack.c.bf16 %v63_v4, %v62_v3  ;;  %v274_v6 = vld [vmem:[#allocation6] sm:$0xff]   ;;  %v275_v7 = vld [vmem:[#allocation6 + $0x8] sm:$0xff]  }
  0x39   :  { %248 = vmatpush3.bf16.msra.mxu0 %v272_v1  ;;  %256 = vmatpush3.bf16.msra.mxu1 %v274_v6  ;;  %v233_v8 = vld [vmem:[%s451_s2] ss:$0 sm:$0xff] }
  0x3a   :  { %249 = vmatprep.subr.bf16.mxu0 %v361_v0  ;;  %257 = vmatprep.subr.bf16.mxu1 %v361_v0  ;;  %v237_v18 = vld [vmem:[%s453_s4] ss:$0 sm:$0xff] }
  0x3d   :  { %250 = vmatpush3.bf16.msra.mxu0 %v273_v2  ;;  %258 = vmatpush3.bf16.msra.mxu1 %v275_v7 }
  0x40   :  { %252 = vmatmul.mubr.msk.bf16.vlgmr.msra.gmra.mrb[0].mxu0 %vm88_vm1, %v64_v5 }
 0x113   :  { %v126_v9 = vpop.f32.mrb[0].mxu0 }
 0x114   :  { %v127_v10 = vadd.f32 %v233_v8, %v126_v9  ;;  %v253_v11 = vpop.f32.mrb[1].mxu0 }
 0x115   :  { %v129_v12 = vpop.f32.mrb[2].mxu0 }
 0x116   :  { %v130_v13 = vadd.f32 %v233_v8, %v129_v12  ;;  %v254_v14 = vpop.f32.mrb[3].mxu0  ;;  %v133_v15 = vmax.f32 %v127_v10, 0.0 }
 0x118   :  { %v134_v16 = vmax.f32 %v130_v13, 0.0 }
 0x11a   :  { %v135_v17 = vpack.c.bf16 %v134_v16, %v133_v15 }
 0x11c   :  { %260 = vmatmul.mubr.msk.bf16.vlgmr.msra.gmra.mrb[0].mxu1 %vm88_vm1, %v135_v17 }
 0x1ef   :  { %v196_v19 = vpop.f32.mrb[0].mxu1 }
 0x1f0   :  { %v197_v20 = vadd.f32 %v237_v18, %v196_v19  ;;  %v261_v21 = vpop.f32.mrb[1].mxu1 }
 0x1f1   :  { %v199_v22 = vpop.f32.mrb[2].mxu1 }
 0x1f2   :  { %203 = vmax.xlane.f32.xlu0 %v197_v20  ;;  %v262_v23 = vpop.f32.mrb[3].mxu1  ;;  %v200_v24 = vadd.f32 %v237_v18, %v199_v22 }
 0x1f6   :  { %205 = vmax.xlane.f32.xlu0 %v200_v24 }
 0x27f   :  { %v204_v25 = vpop.xlane.xlu0 %203 }
 0x280   :  { %v207_v26 = vsub.f32 %v197_v20, %v204_v25 }
 0x282   :  { %v209_v27 = vmul.f32 1.442695, %v207_v26 }
 0x283   :  { %v206_v28 = vpop.xlane.xlu0 %205 }
 0x284   :  { %v208_v29 = vsub.f32 %v200_v24, %v206_v28  ;;  %276 = vpow2.f32 %v209_v27 }
 0x286   :  { %v211_v30 = vmul.f32 1.442695, %v208_v29 }
 0x288   :  { %278 = vpow2.f32 %v211_v30 }
 0x28e   :  { %v277_v31 = vpop.eup %276 }
 0x28f   :  { %213 = vadd.xlane.f32.xlu1 %v277_v31 }
 0x292   :  { %v279_v32 = vpop.eup %278 }
 0x293   :  { %215 = vadd.xlane.f32.xlu1 %v279_v32 }
 0x31c   :  { %v214_v33 = vpop.xlane.xlu1 %213 }
 0x31d   :  { %280 = vlog2.f32 %v214_v33 }
 0x320   :  { %v216_v34 = vpop.xlane.xlu1 %215 }
 0x321   :  { %282 = vlog2.f32 %v216_v34 }
 0x327   :  { %v281_v35 = vpop.eup %280 }
 0x328   :  { %v218_v36 = vmul.f32 0.6931472, %v281_v35 }
 0x32a   :  { %v221_v37 = vadd.f32 %v218_v36, %v204_v25 }
 0x32b   :  { %v283_v38 = vpop.eup %282 }
 0x32c   :  { %v223_v39 = vsub.f32 %v197_v20, %v221_v37  ;;  %v220_v40 = vmul.f32 0.6931472, %v283_v38 }
 0x32e   :  { %225 = vst [vmem:[%s454_s5] sm:$0xff] %v223_v39  ;;  %v222_v41 = vadd.f32 %v220_v40, %v206_v28 }
 0x330   :  { %v224_v42 = vsub.f32 %v200_v24, %v222_v41 }
 0x332   :  { %226 = vst [vmem:[%s454_s5 + $0x8] sm:$0xff] %v224_v42 }
 0x333   :  { %231 = vsyncpa [#allocation3], 1 }
 0x334   :  { %232 = vsyncpa [#allocation5], 1 }

</bundles_post_ra>
